<compile_context>
chip_gen: v7x
topology: tpu7x:2x2x1
jax: 0.10.0
libtpu: 0.0.40
codegen_flags: <defaults>
</compile_context>

<pallas_src>
import functools

import jax
import jax.numpy as jnp
from jax.experimental import pallas as pl
from jax.experimental.pallas import tpu as pltpu


# ----------------------------------------------------------------------------
# Kernel (n_hidden = 1), transposed layout: features on sublanes, batch on lanes.
#   s_net = Lin -> Tanh -> Lin -> Tanh -> Lin   (rows [0:H]  of every hidden)
#   t_net = Lin -> ReLU -> Lin -> ReLU -> Lin   (rows [H:2H] of every hidden)
# ----------------------------------------------------------------------------
def _make_coupling_kernel(C, D, H):
    H2 = 2 * H
    f32 = jnp.float32

    def kernel(xy_ref, maskp_ref, w0_ref, w1_ref, w2_ref, b_ref, out_ref):
        # All sublane slice points below (D=8-, H=32-multiples) are 8-aligned,
        # so no relayout copies are generated.
        xy = xy_ref[...].astype(f32)            # (D+C, bt): [x ; y], bf16 input -> f32 compute
        maskp = maskp_ref[...]                  # (D+C, 1) : [mask ; ones], broadcasts over lanes
        b = b_ref[...]                          # (4H+2D, 1)

        in0 = xy * maskp                        # (D+C, bt) = [x*mask ; y]  (s/t-net input)
        x = xy[:D, :]                           # (D, bt)
        inv_mask = 1.0 - maskp[:D, :]           # (D, 1)

        b0 = b[0:H2]                            # (2H, 1)
        b1 = b[H2:2 * H2]                       # (2H, 1)
        b2 = b[2 * H2:]                         # (2D, 1)

        dot = functools.partial(jnp.dot, preferred_element_type=f32,
                                precision=jax.lax.Precision.HIGHEST)

        def act(h):
            # tanh only on the s-net rows, relu only on the t-net rows
            # (sublane slices at H, a multiple of 8) -> half the EUP work.
            return jnp.concatenate(
                [jnp.tanh(h[:H, :]), jnp.maximum(h[H:, :], 0.0)], axis=0)

        # Three fused MXU dots (both nets evaluated together, block-diagonal W1/W2).
        h = act(dot(w0_ref[...], in0) + b0)     # (2H, bt)
        h = act(dot(w1_ref[...], h) + b1)       # (2H, bt)
        o = dot(w2_ref[...], h) + b2            # (2D, bt) = [s ; t_raw]

        # Affine coupling (matches the PyTorch module's forward()).
        log_s = jnp.tanh(o[:D, :]) * inv_mask   # (D, bt)
        u = x * jnp.exp(log_s) + o[D:, :] * inv_mask

        # Single lane-dense output slab: [u ; log_s] along sublanes.
        out_ref[...] = jnp.concatenate([u, log_s], axis=0)          # (2D, bt)

    return kernel


# ----------------------------------------------------------------------------
# Wrapper: standard (B, D)/(B, C) in, (B, D) out; transposition/padding is
# layout plumbing done once outside the kernel.
# ----------------------------------------------------------------------------
def linear_masked_coupling_forward(x, y, packed_params, *, block_b=None,
                                   input_dtype=None):
    """x: (B, D) f32, y: (B, C) f32.
    packed_params = pack_coupling_params(...) output:
        (w0t (2H, D+C), w1t (2H, 2H), w2t (2D, 2H), bias (4H+2D, 1), maskp (D+C, 1)).
    input_dtype: optional dtype (e.g. jnp.bfloat16) for the activation input DMA.
    Returns (u, log_abs_det_jacobian), each (B, D) f32."""
    w0t, w1t, w2t, bcol, maskp = packed_params
    B, D = x.shape
    C = y.shape[1]
    H2 = w1t.shape[0]
    D2 = 2 * D
    assert maskp.shape == (D + C, 1)

    # ---- batch tiling: big lane-dense tiles; even grid (>=2) so the "parallel"
    # axis shards across both v7x TensorCores; ragged B handled by zero-padding.
    MAX_TILE = 16384                      # ~4 MiB double-buffered at f32 -> fits every gen
    if block_b is None:
        n_tiles = max(2, pl.cdiv(B, MAX_TILE))
        if n_tiles % 2:
            n_tiles += 1
        block_b = 128 * pl.cdiv(pl.cdiv(B, n_tiles), 128)
    else:
        assert block_b % 128 == 0, "block_b must be a multiple of 128 (lane-dense tiles)"
        n_tiles = pl.cdiv(B, block_b)
    B_pad = n_tiles * block_b

    # Lane-major (batch-on-lanes) input: [x ; y] along sublanes, zero-padded lanes.
    xy = jnp.concatenate([x, y], axis=-1).T                     # (D+C, B)
    if B_pad != B:
        xy = jnp.pad(xy, ((0, 0), (0, B_pad - B)))
    if input_dtype is not None:
        xy = xy.astype(input_dtype)

    kernel = _make_coupling_kernel(C, D, H2 // 2)

    out = pl.pallas_call(
        kernel,
        out_shape=jax.ShapeDtypeStruct((D2, B_pad), jnp.float32),
        grid=(n_tiles,),
        in_specs=[
            pl.BlockSpec((D + C, block_b), lambda i: (0, i)),    # xy^T batch tile
            pl.BlockSpec((D + C, 1), lambda i: (0, 0)),          # padded mask column
            pl.BlockSpec((H2, D + C), lambda i: (0, 0)),         # packed W0^T
            pl.BlockSpec((H2, H2), lambda i: (0, 0)),            # packed W1^T (block-diag)
            pl.BlockSpec((D2, H2), lambda i: (0, 0)),            # packed W2^T (block-diag)
            pl.BlockSpec((2 * H2 + D2, 1), lambda i: (0, 0)),    # packed bias columns
        ],
        out_specs=pl.BlockSpec((D2, block_b), lambda i: (0, i)),
        compiler_params=pltpu.CompilerParams(
            dimension_semantics=("parallel",),
            vmem_limit_bytes=32 * 1024 * 1024),   # explicit: v5e scoped default is 16 MiB
    )(xy, maskp, w0t, w1t, w2t, bcol)

    u = out[:D, :B].T
    log_abs_det_jacobian = out[D:, :B].T
    return u, log_abs_det_jacobian


# ----------------------------------------------------------------------------
# One-time parameter packing (outside the hot path), transposed layout.
# ----------------------------------------------------------------------------
def _block_diag(a, b):
    za = jnp.zeros((a.shape[0], b.shape[1]), a.dtype)
    zb = jnp.zeros((b.shape[0], a.shape[1]), b.dtype)
    top = jnp.concatenate([a, za], axis=1)
    bot = jnp.concatenate([zb, b], axis=1)
    return jnp.concatenate([top, bot], axis=0)


def pack_coupling_params(mask, s_params, t_params):
    """mask: (1, D) or (D,). Per-net params, input-major with input order [y, x]:
    (w0 (C+D, H), b0 (H,), w1 (H, H), b1 (H,), w2 (H, D), b2 (D,)).
    Returns the 5 packed kernel inputs in the feature-on-sublane layout."""
    sw0, sb0, sw1, sb1, sw2, sb2 = s_params
    tw0, tb0, tw1, tb1, tw2, tb2 = t_params
    D = sw2.shape[1]
    C = sw0.shape[0] - D

    def reorder(w):   # [y, x] input rows -> [x, y] (kernel stacks x above y)
        return jnp.concatenate([w[C:], w[:C]], axis=0)

    w0t = jnp.concatenate([reorder(sw0).T, reorder(tw0).T], axis=0)      # (2H, D+C)
    w1t = _block_diag(sw1.T, tw1.T)                                      # (2H, 2H)
    w2t = _block_diag(sw2.T, tw2.T)                                      # (2D, 2H)
    bcol = jnp.concatenate([sb0, tb0, sb1, tb1, sb2, tb2])[:, None]      # (4H+2D, 1)
    mask_flat = jnp.asarray(mask).reshape(-1).astype(jnp.float32)        # (D,)
    maskp = jnp.concatenate([mask_flat, jnp.ones((C,), jnp.float32)])[:, None]  # (D+C, 1)
    return (w0t.astype(jnp.float32), w1t.astype(jnp.float32),
            w2t.astype(jnp.float32), bcol.astype(jnp.float32), maskp)


# ----------------------------------------------------------------------------
# Plain-JAX reference (matches the PyTorch module's forward()).
# ----------------------------------------------------------------------------
def reference_forward(x, y, mask, s_params, t_params):
    inp = jnp.concatenate([y, x * mask], axis=-1)

    def mlp(params, act):
        w0, b0, w1, b1, w2, b2 = params
        h = act(inp @ w0 + b0)
        h = act(h @ w1 + b1)
        return h @ w2 + b2

    s = mlp(s_params, jnp.tanh)
    t = mlp(t_params, lambda v: jnp.maximum(v, 0.0)) * (1.0 - mask)
    log_s = jnp.tanh(s) * (1.0 - mask)
    return x * jnp.exp(log_s) + t, log_s


def make_mlp_params(key, in_dim, hidden, out_dim):
    ks = jax.random.split(key, 6)
    s0 = 1.0 / jnp.sqrt(in_dim)
    s1 = 1.0 / jnp.sqrt(hidden)
    w0 = jax.random.normal(ks[0], (in_dim, hidden), jnp.float32) * s0
    b0 = jax.random.normal(ks[1], (hidden,), jnp.float32) * 0.01
    w1 = jax.random.normal(ks[2], (hidden, hidden), jnp.float32) * s1
    b1 = jax.random.normal(ks[3], (hidden,), jnp.float32) * 0.01
    w2 = jax.random.normal(ks[4], (hidden, out_dim), jnp.float32) * s1
    b2 = jax.random.normal(ks[5], (out_dim,), jnp.float32) * 0.01
    return (w0, b0, w1, b1, w2, b2)


if __name__ == "__main__":
    B = 16     # batch (deliberately not a multiple of 128 -> exercises padding)
    D = 8      # input_size
    C = 4      # cond_label_size
    H = 32     # hidden_size  (n_hidden = 1 baked into the kernel structure)

    key = jax.random.PRNGKey(0)
    kx, ky, ks, kt = jax.random.split(key, 4)

    x = jax.random.normal(kx, (B, D), jnp.float32)
    y = jax.random.normal(ky, (B, C), jnp.float32)
    # Alternating binary mask, as used for RealNVP coupling layers.
    mask = (jnp.arange(D) % 2).astype(jnp.float32).reshape(1, D)

    s_params = make_mlp_params(ks, C + D, H, D)
    t_params = make_mlp_params(kt, C + D, H, D)
    packed = pack_coupling_params(mask, s_params, t_params)

    u_ref, log_ref = reference_forward(x, y, mask, s_params, t_params)

    # f32 path (default tiling: B padded to 256, grid=(2,) of 128-lane tiles).
    u, log_det = linear_masked_coupling_forward(x, y, packed)
    u = jax.block_until_ready(u)
    log_det = jax.block_until_ready(log_det)
    assert u.shape == (B, D) and log_det.shape == (B, D)
    assert jnp.allclose(u, u_ref, atol=1e-5, rtol=1e-5)
    assert jnp.allclose(log_det, log_ref, atol=1e-5, rtol=1e-5)

    # bf16 activation-input path (halves the dominant HBM traffic at large B);
    # compute stays f32, tolerance loosened only for the bf16 rounding of x.
    u_bf, log_bf = linear_masked_coupling_forward(x, y, packed,
                                                  input_dtype=jnp.bfloat16)
    u_bf = jax.block_until_ready(u_bf)
    log_bf = jax.block_until_ready(log_bf)
    assert jnp.allclose(u_bf, u_ref, atol=5e-2, rtol=5e-2)
    assert jnp.allclose(log_bf, log_ref, atol=5e-2, rtol=5e-2)

    print("KERNEL_OK")
</pallas_src>

<mosaic_0001>
module attributes {stable_mosaic.version = 11 : i64} {
  func.func @kernel(%arg0: i32, %arg1: memref<12x128xf32, #tpu.memory_space<vmem>>, %arg2: memref<12x1xf32, #tpu.memory_space<vmem>>, %arg3: memref<64x12xf32, #tpu.memory_space<vmem>>, %arg4: memref<64x64xf32, #tpu.memory_space<vmem>>, %arg5: memref<16x64xf32, #tpu.memory_space<vmem>>, %arg6: memref<144x1xf32, #tpu.memory_space<vmem>>, %arg7: memref<16x128xf32, #tpu.memory_space<vmem>>) attributes {dimension_semantics = [#tpu.dimension_semantics<parallel>], iteration_bounds = array<i64: 2>, scalar_prefetch = 0 : i64, scratch_operands = 0 : i64, tpu.core_type = #tpu.core_type<tc>, window_params = [{transform_indices = @transform_0, window_bounds = array<i64: 12, 128>}, {pipeline_mode = #tpu.pipeline_mode<synchronous>, transform_indices = @transform_1, window_bounds = array<i64: 12, 1>}, {pipeline_mode = #tpu.pipeline_mode<synchronous>, transform_indices = @transform_2, window_bounds = array<i64: 64, 12>}, {pipeline_mode = #tpu.pipeline_mode<synchronous>, transform_indices = @transform_3, window_bounds = array<i64: 64, 64>}, {pipeline_mode = #tpu.pipeline_mode<synchronous>, transform_indices = @transform_4, window_bounds = array<i64: 16, 64>}, {pipeline_mode = #tpu.pipeline_mode<synchronous>, transform_indices = @transform_5, window_bounds = array<i64: 144, 1>}, {transform_indices = @transform_6, window_bounds = array<i64: 16, 128>}]} {
    %c0 = arith.constant 0 : index
    %c0_0 = arith.constant 0 : index
    %0 = vector.load %arg1[%c0, %c0_0] : memref<12x128xf32, #tpu.memory_space<vmem>>, vector<12x128xf32>
    %c0_1 = arith.constant 0 : index
    %c0_2 = arith.constant 0 : index
    %1 = vector.load %arg2[%c0_1, %c0_2] : memref<12x1xf32, #tpu.memory_space<vmem>>, vector<12x1xf32>
    %c0_3 = arith.constant 0 : index
    %c0_4 = arith.constant 0 : index
    %2 = vector.load %arg6[%c0_3, %c0_4] : memref<144x1xf32, #tpu.memory_space<vmem>>, vector<144x1xf32>
    %3 = vector.broadcast %1 : vector<12x1xf32> to vector<12x128xf32>
    %4 = arith.mulf %0, %3 : vector<12x128xf32>
    %5 = vector.extract_strided_slice %0 {offsets = [0, 0], sizes = [8, 128], strides = [1, 1]} : vector<12x128xf32> to vector<8x128xf32>
    %6 = vector.extract_strided_slice %1 {offsets = [0, 0], sizes = [8, 1], strides = [1, 1]} : vector<12x1xf32> to vector<8x1xf32>
    %cst = arith.constant 1.000000e+00 : f32
    %7 = vector.broadcast %cst : f32 to vector<8x1xf32>
    %8 = arith.subf %7, %6 : vector<8x1xf32>
    %9 = vector.extract_strided_slice %2 {offsets = [0, 0], sizes = [64, 1], strides = [1, 1]} : vector<144x1xf32> to vector<64x1xf32>
    %10 = vector.extract_strided_slice %2 {offsets = [64, 0], sizes = [64, 1], strides = [1, 1]} : vector<144x1xf32> to vector<64x1xf32>
    %11 = vector.extract_strided_slice %2 {offsets = [128, 0], sizes = [16, 1], strides = [1, 1]} : vector<144x1xf32> to vector<16x1xf32>
    %c0_5 = arith.constant 0 : index
    %c0_6 = arith.constant 0 : index
    %12 = vector.load %arg3[%c0_5, %c0_6] : memref<64x12xf32, #tpu.memory_space<vmem>>, vector<64x12xf32>
    %cst_7 = arith.constant dense<0.000000e+00> : vector<64x128xf32>
    %13 = tpu.matmul %12, %4, %cst_7 {dimension_numbers = #tpu.dot_dimension_numbers<[1], [0], [0], [1], [0, 0, 1, 1], [], []>, precision = #tpu.contract_precision<fp32>} : vector<64x12xf32>, vector<12x128xf32>, vector<64x128xf32> -> vector<64x128xf32>
    %14 = vector.broadcast %9 : vector<64x1xf32> to vector<64x128xf32>
    %15 = arith.addf %13, %14 : vector<64x128xf32>
    %16 = vector.extract_strided_slice %15 {offsets = [0, 0], sizes = [32, 128], strides = [1, 1]} : vector<64x128xf32> to vector<32x128xf32>
    %17 = math.tanh %16 : vector<32x128xf32>
    %18 = vector.extract_strided_slice %15 {offsets = [32, 0], sizes = [32, 128], strides = [1, 1]} : vector<64x128xf32> to vector<32x128xf32>
    %cst_8 = arith.constant 0.000000e+00 : f32
    %19 = vector.broadcast %cst_8 : f32 to vector<32x128xf32>
    %20 = arith.maximumf %18, %19 : vector<32x128xf32>
    %21 = tpu.concatenate %17, %20 in 0 : vector<32x128xf32>, vector<32x128xf32> -> vector<64x128xf32>
    %c0_9 = arith.constant 0 : index
    %c0_10 = arith.constant 0 : index
    %22 = vector.load %arg4[%c0_9, %c0_10] : memref<64x64xf32, #tpu.memory_space<vmem>>, vector<64x64xf32>
    %cst_11 = arith.constant dense<0.000000e+00> : vector<64x128xf32>
    %23 = tpu.matmul %22, %21, %cst_11 {dimension_numbers = #tpu.dot_dimension_numbers<[1], [0], [0], [1], [0, 0, 1, 1], [], []>, precision = #tpu.contract_precision<fp32>} : vector<64x64xf32>, vector<64x128xf32>, vector<64x128xf32> -> vector<64x128xf32>
    %24 = vector.broadcast %10 : vector<64x1xf32> to vector<64x128xf32>
    %25 = arith.addf %23, %24 : vector<64x128xf32>
    %26 = vector.extract_strided_slice %25 {offsets = [0, 0], sizes = [32, 128], strides = [1, 1]} : vector<64x128xf32> to vector<32x128xf32>
    %27 = math.tanh %26 : vector<32x128xf32>
    %28 = vector.extract_strided_slice %25 {offsets = [32, 0], sizes = [32, 128], strides = [1, 1]} : vector<64x128xf32> to vector<32x128xf32>
    %cst_12 = arith.constant 0.000000e+00 : f32
    %29 = vector.broadcast %cst_12 : f32 to vector<32x128xf32>
    %30 = arith.maximumf %28, %29 : vector<32x128xf32>
    %31 = tpu.concatenate %27, %30 in 0 : vector<32x128xf32>, vector<32x128xf32> -> vector<64x128xf32>
    %c0_13 = arith.constant 0 : index
    %c0_14 = arith.constant 0 : index
    %32 = vector.load %arg5[%c0_13, %c0_14] : memref<16x64xf32, #tpu.memory_space<vmem>>, vector<16x64xf32>
    %cst_15 = arith.constant dense<0.000000e+00> : vector<16x128xf32>
    %33 = tpu.matmul %32, %31, %cst_15 {dimension_numbers = #tpu.dot_dimension_numbers<[1], [0], [0], [1], [0, 0, 1, 1], [], []>, precision = #tpu.contract_precision<fp32>} : vector<16x64xf32>, vector<64x128xf32>, vector<16x128xf32> -> vector<16x128xf32>
    %34 = vector.broadcast %11 : vector<16x1xf32> to vector<16x128xf32>
    %35 = arith.addf %33, %34 : vector<16x128xf32>
    %36 = vector.extract_strided_slice %35 {offsets = [0, 0], sizes = [8, 128], strides = [1, 1]} : vector<16x128xf32> to vector<8x128xf32>
    %37 = math.tanh %36 : vector<8x128xf32>
    %38 = vector.broadcast %8 : vector<8x1xf32> to vector<8x128xf32>
    %39 = arith.mulf %37, %38 : vector<8x128xf32>
    %40 = math.exp %39 : vector<8x128xf32>
    %41 = arith.mulf %5, %40 : vector<8x128xf32>
    %42 = vector.extract_strided_slice %35 {offsets = [8, 0], sizes = [8, 128], strides = [1, 1]} : vector<16x128xf32> to vector<8x128xf32>
    %43 = vector.broadcast %8 : vector<8x1xf32> to vector<8x128xf32>
    %44 = arith.mulf %42, %43 : vector<8x128xf32>
    %45 = arith.addf %41, %44 : vector<8x128xf32>
    %46 = tpu.concatenate %45, %39 in 0 : vector<8x128xf32>, vector<8x128xf32> -> vector<16x128xf32>
    %c0_16 = arith.constant 0 : index
    %c0_17 = arith.constant 0 : index
    %47 = vector.load %arg7[%c0_16, %c0_17] : memref<16x128xf32, #tpu.memory_space<vmem>>, vector<16x128xf32>
    tpu.vector_store %arg7[%c0_16, %c0_17], %46 {strides = array<i32>} : memref<16x128xf32, #tpu.memory_space<vmem>>, vector<16x128xf32>,
    return
  }
  func.func @transform_0(%arg0: i32) -> (i32, i32) {
    %c0_i32 = arith.constant 0 : i32
    %c0_i32_0 = arith.constant 0 : i32
    return %c0_i32, %arg0 : i32, i32
  }
  func.func @transform_1(%arg0: i32) -> (i32, i32) {
    %c0_i32 = arith.constant 0 : i32
    %c0_i32_0 = arith.constant 0 : i32
    %c0_i32_1 = arith.constant 0 : i32
    return %c0_i32, %c0_i32_0 : i32, i32
  }
  func.func @transform_2(%arg0: i32) -> (i32, i32) {
    %c0_i32 = arith.constant 0 : i32
    %c0_i32_0 = arith.constant 0 : i32
    %c0_i32_1 = arith.constant 0 : i32
    return %c0_i32, %c0_i32_0 : i32, i32
  }
  func.func @transform_3(%arg0: i32) -> (i32, i32) {
    %c0_i32 = arith.constant 0 : i32
    %c0_i32_0 = arith.constant 0 : i32
    %c0_i32_1 = arith.constant 0 : i32
    return %c0_i32, %c0_i32_0 : i32, i32
  }
  func.func @transform_4(%arg0: i32) -> (i32, i32) {
    %c0_i32 = arith.constant 0 : i32
    %c0_i32_0 = arith.constant 0 : i32
    %c0_i32_1 = arith.constant 0 : i32
    return %c0_i32, %c0_i32_0 : i32, i32
  }
  func.func @transform_5(%arg0: i32) -> (i32, i32) {
    %c0_i32 = arith.constant 0 : i32
    %c0_i32_0 = arith.constant 0 : i32
    %c0_i32_1 = arith.constant 0 : i32
    return %c0_i32, %c0_i32_0 : i32, i32
  }
  func.func @transform_6(%arg0: i32) -> (i32, i32) {
    %c0_i32 = arith.constant 0 : i32
    %c0_i32_0 = arith.constant 0 : i32
    return %c0_i32, %arg0 : i32, i32
  }
}

</mosaic_0001>

<bundles_post_ra>
// kernel: tpu_custom_call.1
= control target key start
LH: loop header
LB: loop body
LE: loop exit
PB: predicated region body
PF: predicated region fallthrough
CT: control target
= control target key end

     0   :  { %11 = vsyncpa [#allocation4], 0  ;;  %s4492_s0 = inlined_call_operand.vmem [shape: f32[12,256], index: 0, kind: input, shape index: {}]   ;;  %s4493_s1 = inlined_call_operand.vmem [shape: f32[12,1], index: 1, kind: input, shape index: {}]   ;;  %s4494_s2 = inlined_call_operand.vmem [shape: f32[64,12], index: 2, kind: input, shape index: {}]   ;;  %s4495_s3 = inlined_call_operand.vmem [shape: f32[64,64], index: 3, kind: input, shape index: {}]   ;;  %s4496_s4 = inlined_call_operand.vmem [shape: f32[16,64], index: 4, kind: input, shape index: {}]   ;;  %s4497_s5 = inlined_call_operand.vmem [shape: f32[144,1], index: 5, kind: input, shape index: {}]   ;;  %s4498_s6 = inlined_call_operand.hbm [shape: f32[16,256], index: 6, kind: output, shape index: {}]  }
   0x1   :  { %13 = vsyncpa [#allocation4 + $0x1], 0  ;;  %s3880_s21 = smov 0   ;;  %s3882_s22 = smov 0  }
   0x2   :  { %s3884_s23 = smov 0   ;;  %s3886_s24 = smov 0  }
   0x3 LB: > { %s2779_s25 = sadd.s32 4294967295, %s3838_s24   ;;  %s2780_s26 = sadd.s32 4294967294, %s3838_s24   ;;  %s3838_s24 = sphi %s3886_s24, %s4504_s24   ;;  %s3834_s23 = sphi %s3884_s23, %s4503_s23   ;;  %s3830_s22 = sphi %s3882_s22, %s4502_s22   ;;  %s3826_s21 = sphi %s3880_s21, %s4501_s21  }
   0x4   : > { %s3903_s27 = sadd.s32 1, %s3838_s24   ;;  %s26_s28 = sadd.s32 1, %s3834_s23 }
   0x5   : > { %s23_s29 = ssub.s32 %s3838_s24, %s3903_s27  ;;  %p33_p0 = scmp.ne.s32.totalorder %s3834_s23, %s3830_s22 }
   0x6   : > { %p24_p1 = scmp.eq.s32.totalorder %s23_s29, 0  ;;  %p34_p2 = scmp.eq.s32.totalorder %s3838_s24, 0 }
   0x7   : > { %p168_p3 = scmp.eq.s32.totalorder %s2779_s25, 1  ;;  %p173_p4 = scmp.ne.s32.totalorder %s3830_s22, %s3826_s21 }
   0x8   : > { %s3916_s30 = scalar_select %p24_p1, %s3834_s23, %s26_s28  }
   0x9   : > { %p35_p5 = por %p34_p2, %p33_p0  ;;  %p3918_p6 = por %p168_p3, %p33_p0 }
   0xa   : > { %p174_p7 = scmp.eq.s32.totalorder %s2780_s26, 1  ;;  %p2782_p9 = scmp.ge.s32.totalorder %s3838_s24, 2 }
   0xc   : > { %p3922_p8 = por %p174_p7, %p173_p4  ;;  %205 = sbr.rel (%p2782_p9) target bundleno = 26 (0x1a), region = 36 }
  0x13   : > { %208 = sbr.rel (!%p35_p5) target bundleno = 26 (0x1a), region = 40  ;;  %s210_s9 = sand.u32 (%p35_p5), 1, %s3834_s23  }
  0x14   : > { %s2784_s10 = sshll.u32 (%p35_p5), %s3838_s24, 3  ;;  %s2783_s11 = sshll.u32 (%p35_p5), %s210_s9, 4 }
  0x15   : > { %s214_s14 = scalar_lea.vmem (%p35_p5), %s4492_s0, %s2784_s10  ;;  %s212_s15 = scalar_lea.vmem (%p35_p5), [#allocation2], %s2783_s11 }
  0x16   : > { %v244_v0 = vld [vmem:[%s214_s14] sm:$0xff] (%p35_p5)  ;;  %v246_v1 = vld [vmem:[%s214_s14 + $0x10] sm:$0xff] (%p35_p5) }
  0x17   : > { %245 = vst [vmem:[%s212_s15] sm:$0xff] (%p35_p5), %v244_v0  ;;  %247 = vst [vmem:[%s212_s15 + $0x8] sm:$0xff] (%p35_p5), %v246_v1 }
  0x1a PF: > { %p2785_p10 = scmp.ge.s32.totalorder %s3838_s24, 1  ;;  %p252_p11 = scmp.lt.s32.totalorder %s3838_s24, 3 }
  0x1c   : > { %p253_p12 = pnand %p2785_p10, %p252_p11 }
  0x1d   : > { %v291_v2 = vld [vmem:[%s4493_s1 + $0x8] sm:$0xf] (!%p253_p12)  ;;  %v3840_v3 = vmov (!%p253_p12), 0   ;;  %v290_v4 = vld [vmem:[%s4493_s1] sm:$0xff] (!%p253_p12)  ;;  %vm371_vm0 = vcmask (!%p253_p12), 97280   ;;  %v294_v8 = vld [vmem:[%s4497_s5 + $0x10] sm:$0xff] (!%p253_p12) }
  0x1e   : > { %256 = sbr.rel (%p253_p12) target bundleno = 1128 (0x468), region = 78  ;;  %3753 = vset.pattern.permute.xlu0 (!%p253_p12), %v3840_v3  ;;  %3754 = vset.pattern.permute.xlu1 (!%p253_p12), %v3840_v3  ;;  %v323_v5 = vld [vmem:[%s4494_s2] sm:$0xff] (!%p253_p12)  ;;  %v298_v14 = vld [vmem:[%s4497_s5 + $0x30] sm:$0xff] (!%p253_p12)  ;;  %v309_v20 = vld [vmem:[%s4497_s5 + $0x88] sm:$0xff] (!%p253_p12)  ;;  %v322_v30 = vsub.f32 (!%p253_p12), 1.0, %v290_v4  ;;  %s259_s15 = sand.u32 (!%p253_p12), 1, %s3830_s22  }
  0x1f   : > { %317 = vperm.xlu0 (!%p253_p12), %3753, %v291_v2   ;;  %v373_v6 = vsel (!%p253_p12), %vm371_vm0, %v323_v5, 0  ;;  %v296_v11 = vld [vmem:[%s4497_s5 + $0x20] sm:$0xff] (!%p253_p12)  ;;  %v302_v16 = vld [vmem:[%s4497_s5 + $0x50] sm:$0xff] (!%p253_p12)  ;;  %v293_v22 = vld [vmem:[%s4497_s5 + $0x8] sm:$0xff] (!%p253_p12)  ;;  %s4020_s18 = sshll.u32 (!%p253_p12), %s259_s15, 4  ;;  %vm396_vm1 = vcmask (!%p253_p12), 1043456  }
  0x20   : > { %v3946_v7 = vand.u32 (!%p253_p12), 4294901760, %v373_v6  ;;  %v300_v15 = vld [vmem:[%s4497_s5 + $0x40] sm:$0xff] (!%p253_p12)  ;;  %v306_v18 = vld [vmem:[%s4497_s5 + $0x70] sm:$0xff] (!%p253_p12)  ;;  %v295_v23 = vld [vmem:[%s4497_s5 + $0x18] sm:$0xff] (!%p253_p12)  ;;  %s4038_s10 = scalar_lea.vmem (!%p253_p12), [#allocation2], %s4020_s18  ;;  %vm1216_vm2 = vcmask (!%p253_p12), 523264  }
  0x21   : > { %v304_v17 = vld [vmem:[%s4497_s5 + $0x60] sm:$0xff] (!%p253_p12)  ;;  %v297_v24 = vld [vmem:[%s4497_s5 + $0x28] sm:$0xff] (!%p253_p12)  ;;  %v299_v25 = vld [vmem:[%s4497_s5 + $0x38] sm:$0xff] (!%p253_p12)  ;;  %s287_s11 = scalar_lea.vmem (!%p253_p12), [#allocation3], %s4020_s18  ;;  %s2789_s13 = sshll.u32 (!%p253_p12), %s2779_s25, 7 }
  0x22   : > { %v3952_v9 = vsub.f32 (!%p253_p12), %v373_v6, %v3946_v7  ;;  %v308_v19 = vld [vmem:[%s4497_s5 + $0x80] sm:$0xff] (!%p253_p12)  ;;  %v301_v26 = vld [vmem:[%s4497_s5 + $0x48] sm:$0xff] (!%p253_p12)  ;;  %v303_v27 = vld [vmem:[%s4497_s5 + $0x58] sm:$0xff] (!%p253_p12)  ;;  %s2712_s12 = sshll.u32 (!%p253_p12), %s287_s11, 4  ;;  %s4446_s17 = scalar_lea.hbm (!%p253_p12), %s4498_s6, %s2789_s13  ;;  %s4440_s12 = int_to_ptr.vmem [resolvable:$true] %s2712_s12 }
  0x23   : > { %312 = vperm.xlu0 (!%p253_p12), %3753, %v290_v4   ;;  %v292_v21 = vld [vmem:[%s4497_s5] sm:$0xff] (!%p253_p12)  ;;  %v305_v28 = vld [vmem:[%s4497_s5 + $0x68] sm:$0xff] (!%p253_p12)  ;;  %v307_v29 = vld [vmem:[%s4497_s5 + $0x78] sm:$0xff] (!%p253_p12)  ;;  %s4450_s18 = scalar_lea.sflag (!%p253_p12), [#allocation4], %s259_s15  ;;  %s3776_s25 = scalar_lea.vmem (!%p253_p12), %s4440_s12, 256 }
  0x24   : > { %v469_v10 = vand.u32 (!%p253_p12), 4294901760, %v3952_v9  ;;  %3044 = vmatprep.mubr.f32.mxu0 (!%p253_p12), %v3952_v9  ;;  %333 = vperm.xlu1 (!%p253_p12), %3754, %v292_v21   ;;  %v324_v31 = vld [vmem:[%s4494_s2 + $0x8] sm:$0xff] (!%p253_p12)  ;;  %v325_v32 = vld [vmem:[%s4494_s2 + $0x10] sm:$0xff] (!%p253_p12)  ;;  %v326_v34 = vld [vmem:[%s4494_s2 + $0x18] sm:$0xff] (!%p253_p12)  ;;  %p3777_p13 = scmp.ne.s32.totalorder (!%p253_p12), %s4440_s12, %s3776_s25  ;;  %s3841_s19 = smov (!%p253_p12), [#allocation3]  }
  0x25   : > { %v376_v33 = vsel %vm371_vm0, %v324_v31, 0  ;;  %v379_v35 = vsel %vm371_vm0, %v325_v32, 0  ;;  %v382_v37 = vsel %vm371_vm0, %v326_v34, 0  ;;  %v327_v38 = vld [vmem:[%s4494_s2 + $0x20] sm:$0xff]  ;;  %v328_v40 = vld [vmem:[%s4494_s2 + $0x28] sm:$0xff]  ;;  %v329_v45 = vld [vmem:[%s4494_s2 + $0x30] sm:$0xff] }
  0x26   : > { %v470_v12 = vsub.f32 %v3952_v9, %v469_v10  ;;  %v4026_v36 = vand.u32 4294901760, %v376_v33  ;;  %v4032_v39 = vand.u32 4294901760, %v379_v35  ;;  %v289_v41 = vld [vmem:[%s4038_s10 + $0x8] sm:$0xf]  ;;  %v4044_v43 = vand.u32 4294901760, %v382_v37  ;;  %v288_v53 = vld [vmem:[%s4038_s10] sm:$0xff]  ;;  %p3778_p0 = pnand %p3777_p13, %p3918_p6 }
  0x27   : > { %343 = vperm.xlu0 %3753, %v294_v8   ;;  %v385_v44 = vsel %vm371_vm0, %v327_v38, 0  ;;  %v388_v46 = vsel %vm371_vm0, %v328_v40, 0  ;;  %v391_v51 = vsel %vm371_vm0, %v329_v45, 0  ;;  %v330_v52 = vld [vmem:[%s4494_s2 + $0x38] sm:$0xff]  ;;  %v1168_v9 = vld [vmem:[%s4495_s3] sm:$0xff]  ;;  %s3780_s20 = sshll.u32 %s3841_s19, 4  ;;  %s3781_s20 = int_to_ptr.vmem [resolvable:$false] %s3780_s20 }
  0x28   : > { %v471_v13 = vand.u32 4294901760, %v470_v12  ;;  %338 = vperm.xlu1 %3754, %v293_v22   ;;  %v4042_v42 = vsub.f32 %v376_v33, %v4026_v36  ;;  %v4052_v48 = vsub.f32 %v379_v35, %v4032_v39  ;;  %v4054_v50 = vand.u32 4294901760, %v385_v44  ;;  %p3779_p1 = pneg %p3778_p0  ;;  %p3783_p2 = scmp.lt.s32.totalorder %s4440_s12, %s3781_s20 }
  0x29   : > { %v4063_v55 = vsub.f32 %v382_v37, %v4044_v43  ;;  %v4065_v56 = vand.u32 4294901760, %v388_v46  ;;  %v4068_v61 = vand.u32 4294901760, %v391_v51  ;;  %v394_v62 = vsel %vm371_vm0, %v330_v52, 0 }
  0x2a   : > { %3012 = vmatprep.mubr.f32.mxu1 %v471_v13  ;;  %v479_v54 = vand.u32 4294901760, %v4042_v42  ;;  %v489_v60 = vand.u32 4294901760, %v4052_v48  ;;  %v4072_v0 = vsub.f32 %v385_v44, %v4054_v50  ;;  %v4081_v6 = vand.u32 4294901760, %v394_v62 }
  0x2b   : > { %353 = vperm.xlu0 %3753, %v296_v11   ;;  %v499_v3 = vand.u32 4294901760, %v4063_v55  ;;  %v4079_v4 = vsub.f32 %v388_v46, %v4065_v56  ;;  %v4087_v12 = vsub.f32 %v391_v51, %v4068_v61 }
  0x2c   : > { %348 = vperm.xlu1 %3754, %v295_v23   ;;  %v480_v2 = vsub.f32 %v4042_v42, %v479_v54  ;;  %v490_v11 = vsub.f32 %v4052_v48, %v489_v60  ;;  %v538_v22 = vsub.f32 %v394_v62, %v4081_v6 }
  0x2e   : > { %v491_v23 = vand.u32 4294901760, %v490_v11  ;;  %v539_v31 = vand.u32 4294901760, %v538_v22 }
  0x2f   : > { %363 = vperm.xlu0 %3753, %v298_v14  }
  0x30   : > { %358 = vperm.xlu1 %3754, %v297_v24   ;;  %v529_v24 = vand.u32 4294901760, %v4087_v12  ;;  %v540_v38 = vsub.f32 %v538_v22, %v539_v31 }
  0x32   : > { %v530_v32 = vsub.f32 %v4087_v12, %v529_v24 }
  0x33   : > { %1178 = vperm.xlu0 %3753, %v300_v15   ;;  %v509_v15 = vand.u32 4294901760, %v4072_v0 }
  0x34   : > { %368 = vperm.xlu1 %3754, %v299_v25   ;;  %v531_v40 = vand.u32 4294901760, %v530_v32 }
  0x37   : > { %1188 = vperm.xlu0 %3753, %v302_v16   ;;  %v481_v16 = vand.u32 4294901760, %v480_v2 }
  0x38   : > { %1183 = vperm.xlu1 %3754, %v301_v26   ;;  %v510_v26 = vsub.f32 %v4072_v0, %v509_v15 }
  0x3a   : > { %v511_v34 = vand.u32 4294901760, %v510_v26 }
  0x3b   : > { %1198 = vperm.xlu0 %3753, %v304_v17   ;;  %v500_v17 = vsub.f32 %v4063_v55, %v499_v3 }
  0x3c   : > { %1193 = vperm.xlu1 %3754, %v303_v27  }
  0x3d   : > { %v501_v27 = vand.u32 4294901760, %v500_v17 }
  0x3f   : > { %1208 = vperm.xlu0 %3753, %v306_v18   ;;  %v519_v18 = vand.u32 4294901760, %v4079_v4 }
  0x40   : > { %1203 = vperm.xlu1 %3754, %v305_v28  }
  0x43   : > { %2091 = vperm.xlu0 %3753, %v308_v19  }
  0x44   : > { %1213 = vperm.xlu1 %3754, %v307_v29  }
  0x47   : > { %2096 = vperm.xlu0 %3753, %v309_v20  }
  0x48   : > { %2688 = vperm.xlu1 %3754, %v322_v30   ;;  %v520_v30 = vsub.f32 %v4079_v4, %v519_v18 }
  0x4a   : > { %v521_v37 = vand.u32 4294901760, %v520_v30 }
  0x9e   : > { %v318_v47 = vpop.permute.xlu0 %317 }
  0x9f   : > { %v321_v49 = vmul.f32 %v318_v47, %v289_v41  ;;  %v541_v41 = vand.u32 4294901760, %v540_v38 }
  0xa1   : > { %v398_v57 = vsel %vm396_vm1, %v321_v49, 0 }
  0xa2   : > { %v404_v58 = vand.u32 4294901760, %v398_v57  ;;  %v313_v59 = vpop.permute.xlu0 %312 }
  0xa3   : > { %v320_v63 = vmul.f32 %v313_v59, %v288_v53  ;;  %v334_v52 = vpop.permute.xlu1 %333 }
  0xa4   : > { %v556_v1 = vsub.f32 %v398_v57, %v404_v58 }
  0xa5   : > { %v401_v5 = vand.u32 4294901760, %v320_v63 }
  0xa6   : > { %v557_v8 = vand.u32 4294901760, %v556_v1 }
  0xa7   : > { %v4089_v13 = vpack.c.bf16 %v404_v58, %v401_v5  ;;  %v549_v14 = vsub.f32 %v320_v63, %v401_v5  ;;  %v339_v53 = vpop.permute.xlu1 %338  ;;  %v1171_v58 = vld [vmem:[%s4495_s3 + $0x18] sm:$0xff]  ;;  %v1172_v63 = vld [vmem:[%s4495_s3 + $0x20] sm:$0xff] }
  0xa8   : > { %v558_v21 = vsub.f32 %v556_v1, %v557_v8  ;;  %v1230_v11 = vsel %vm1216_vm2, %v1172_v63, 0 }
  0xa9   : > { %v550_v19 = vand.u32 4294901760, %v549_v14  ;;  %3387 = vmatprep.subr.bf16.mxu1 %v4089_v13  ;;  %v3394_v20 = vpack.c.bf16 %v556_v1, %v549_v14 }
  0xaa   : > { %3389 = vmatpush3.bf16.msra.mxu1 %v4089_v13  ;;  %v559_v29 = vand.u32 4294901760, %v558_v21 }
  0xab   : > { %3395 = vmatprep.subr.bf16.mxu0 %v3394_v20  ;;  %v551_v25 = vsub.f32 %v549_v14, %v550_v19  ;;  %v3402_v35 = vpack.c.bf16 %v557_v8, %v550_v19  ;;  %v349_v59 = vpop.permute.xlu1 %348  ;;  %v1173_v14 = vld [vmem:[%s4495_s3 + $0x28] sm:$0xff] }
  0xac   : > { %3397 = vmatpush3.bf16.msra.mxu0 %v3394_v20 }
  0xad   : > { %3013 = vmatmul.mubr.f32.vlgmr.msra.gmra.mrb[0].mxu1 %v481_v16  ;;  %3399 = vmatprep.subr.bf16.mxu0 %v4089_v13  ;;  %v552_v28 = vand.u32 4294901760, %v551_v25  ;;  %v1233_v25 = vsel %vm1216_vm2, %v1173_v14, 0 }
  0xae   : > { %3015 = vmatprep.mubr.f32.mxu1 %v491_v23 }
  0xaf   : > { %3045 = vmatmul.mubr.f32.vlgmr.msra.gmra.mrb[0].mxu0 %v4042_v42  ;;  %v3390_v33 = vpack.c.bf16 %v559_v29, %v552_v28 }
  0xb0   : > { %3401 = vmatpush3.bf16.msra.mxu0 %v4089_v13  ;;  %3047 = vmatprep.mubr.f32.mxu0 %v4052_v48 }
  0xb1   : > { %3016 = vmatmul.mubr.f32.gmra.mrb[2].mxu1 %v501_v27  ;;  %3391 = vmatprep.subr.bf16.mxu1 %v3390_v33 }
  0xb2   : > { %3403 = vmatprep.subr.bf16.mxu0 %v3402_v35  ;;  %3393 = vmatpush3.bf16.msra.mxu1 %v3390_v33 }
  0xb3   : > { %3048 = vmatmul.mubr.f32.gmra.mrb[2].mxu0 %v4063_v55  ;;  %3018 = vmatprep.mubr.f32.mxu1 %v511_v34  ;;  %v1170_v55 = vld [vmem:[%s4495_s3 + $0x10] sm:$0xff] }
  0xb4   : > { %3050 = vmatprep.mubr.f32.mxu0 %v4072_v0  ;;  %v1224_v57 = vsel %vm1216_vm2, %v1170_v55, 0 }
  0xb5   : > { %3019 = vmatmul.mubr.f32.gmra.mrb[4].mxu1 %v521_v37  ;;  %v4174_v2 = vand.u32 4294901760, %v1224_v57  ;;  %v1175_v37 = vld [vmem:[%s4495_s3 + $0x38] sm:$0xff] }
  0xb6   : > { %3021 = vmatprep.mubr.f32.mxu1 %v531_v40 }
  0xb7   : > { %3051 = vmatmul.mubr.f32.gmra.mrb[4].mxu0 %v4079_v4 }
  0xb8   : > { %3053 = vmatprep.mubr.f32.mxu0 %v4087_v12 }
  0xb9   : > { %3022 = vmatmul.mubr.f32.gmra.mrb[6].mxu1 %v541_v41 }
  0xba   : > { %3028 = vmatprep.mubr.f32.mxu1 %v3946_v7 }
  0xbb   : > { %3054 = vmatmul.mubr.f32.gmra.mrb[6].mxu0 %v538_v22  ;;  %v4189_v22 = vand.u32 4294901760, %v1230_v11 }
  0xbc   : > { %3060 = vmatprep.mubr.f32.mxu0 %v469_v10 }
  0xbd   : > { %3029 = vmatmul.mubr.f32.vlgmr.msra.gmra.mrb[0].mxu1 %v4026_v36  ;;  %v4201_v34 = vsub.f32 %v1230_v11, %v4189_v22 }
  0xbe   : > { %3031 = vmatprep.mubr.f32.mxu1 %v4032_v39 }
  0xbf   : > { %3061 = vmatmul.mubr.f32.vlgmr.msra.gmra.mrb[0].mxu0 %v479_v54  ;;  %v1169_v54 = vld [vmem:[%s4495_s3 + $0x8] sm:$0xff]  ;;  %v1356_v55 = vand.u32 4294901760, %v4201_v34 }
  0xc0   : > { %3405 = vmatpush3.bf16.msra.mxu0 %v3402_v35  ;;  %3063 = vmatprep.mubr.f32.mxu0 %v489_v60  ;;  %v4203_v35 = vand.u32 4294901760, %v1233_v25 }
  0xc1   : > { %3407 = vmatprep.subr.bf16.mxu0 %v4089_v13  ;;  %3032 = vmatmul.mubr.f32.gmra.mrb[2].mxu1 %v4044_v43 }
  0xc2   : > { %3034 = vmatprep.mubr.f32.mxu1 %v4054_v50 }
  0xc3   : > { %3064 = vmatmul.mubr.f32.gmra.mrb[2].mxu0 %v499_v3  ;;  %v1227_v3 = vsel %vm1216_vm2, %v1171_v58, 0 }
  0xc4   : > { %3066 = vmatprep.mubr.f32.mxu0 %v509_v15  ;;  %v359_v15 = vpop.permute.xlu1 %358 }
  0xc5   : > { %3035 = vmatmul.mubr.f32.gmra.mrb[4].mxu1 %v4065_v56 }
  0xc6   : > { %3037 = vmatprep.mubr.f32.mxu1 %v4068_v61 }
  0xc7   : > { %3067 = vmatmul.mubr.f32.gmra.mrb[4].mxu0 %v519_v18  ;;  %v4187_v18 = vsub.f32 %v1224_v57, %v4174_v2 }
  0xc8   : > { %3069 = vmatprep.mubr.f32.mxu0 %v529_v24  ;;  %v369_v38 = vpop.permute.xlu1 %368 }
  0xc9   : > { %3038 = vmatmul.mubr.f32.gmra.mrb[6].mxu1 %v4081_v6  ;;  %v1336_v30 = vand.u32 4294901760, %v4187_v18 }
  0xcb   : > { %3070 = vmatmul.mubr.f32.gmra.mrb[6].mxu0 %v539_v31  ;;  %v1174_v31 = vld [vmem:[%s4495_s3 + $0x30] sm:$0xff] }
  0xcc   : > { %3076 = vmatprep.mubr.f32.mxu0 %v3946_v7 }
  0xcf   : > { %3077 = vmatmul.mubr.f32.vlgmr.msra.gmra.mrb[0].mxu0 %v4026_v36 }
  0xd0   : > { %3409 = vmatpush3.bf16.msra.mxu0 %v4089_v13  ;;  %3079 = vmatprep.mubr.f32.mxu0 %v4032_v39  ;;  %v4181_v13 = vand.u32 4294901760, %v1227_v3 }
  0xd2   : > { %v4194_v27 = vsub.f32 %v1227_v3, %v4181_v13 }
  0xd3   : > { %3080 = vmatmul.mubr.f32.gmra.mrb[2].mxu0 %v4044_v43 }
  0xd4   : > { %3082 = vmatprep.mubr.f32.mxu0 %v4054_v50 }
  0xd7   : > { %3083 = vmatmul.mubr.f32.gmra.mrb[4].mxu0 %v4065_v56 }
  0xd8   : > { %3085 = vmatprep.mubr.f32.mxu0 %v4068_v61 }
  0xdb   : > { %3086 = vmatmul.mubr.f32.gmra.mrb[6].mxu0 %v4081_v6 }
  0xdc   : > { %3092 = vmatprep.mubr.f32.mxu0 %v3946_v7  ;;  %v1218_v7 = vsel %vm1216_vm2, %v1168_v9, 0 }
  0xdd   : > { %v4149_v10 = vand.u32 4294901760, %v1218_v7 }
  0xdf   : > { %3093 = vmatmul.mubr.f32.vlgmr.msra.gmra.mrb[0].mxu0 %v4026_v36  ;;  %v4152_v36 = vsub.f32 %v1218_v7, %v4149_v10 }
  0xe0   : > { %3095 = vmatprep.mubr.f32.mxu0 %v4032_v39 }
  0xe1   : > { %v1316_v39 = vand.u32 4294901760, %v4152_v36 }
  0xe3   : > { %3096 = vmatmul.mubr.f32.gmra.mrb[2].mxu0 %v4044_v43  ;;  %v1317_v42 = vsub.f32 %v4152_v36, %v1316_v39 }
  0xe4   : > { %3098 = vmatprep.mubr.f32.mxu0 %v4054_v50 }
  0xe5   : > { %v1318_v43 = vand.u32 4294901760, %v1317_v42 }
  0xe7   : > { %3099 = vmatmul.mubr.f32.gmra.mrb[4].mxu0 %v4065_v56  ;;  %3120 = vmatprep.mubr.f32.mxu1 %v1318_v43  ;;  %v1221_v56 = vsel %vm1216_vm2, %v1169_v54, 0  ;;  %v1346_v43 = vand.u32 4294901760, %v4194_v27 }
  0xe8   : > { %3101 = vmatprep.mubr.f32.mxu0 %v4068_v61  ;;  %v4169_v60 = vand.u32 4294901760, %v1221_v56  ;;  %v344_v61 = vpop.permute.xlu0 %343 }
  0xea   : > { %v4178_v8 = vsub.f32 %v1221_v56, %v4169_v60  ;;  %v4227_v56 = vsub.f32 %v1233_v25, %v4203_v35 }
  0xeb   : > { %3102 = vmatmul.mubr.f32.gmra.mrb[6].mxu0 %v4081_v6 }
  0xec   : > { %v354_v19 = vpop.permute.xlu0 %353  ;;  %v1326_v24 = vand.u32 4294901760, %v4178_v8 }
  0xee   : > { %v4211_v41 = vsub.f32 %v4178_v8, %v1326_v24 }
  0xf0   : > { %v364_v9 = vpop.permute.xlu0 %363 }
 0x190   : > { %v3030_v44 = vpop.f32.mrb[0].mxu1 }
 0x191   : > { %v624_v45 = vpop.f32.mrb[1].mxu1  ;;  %v3602_v62 = vadd.f32 %v3030_v44, %v339_v53  ;;  %v4215_v44 = vsel %vm1216_vm2, %v1174_v31, 0 }
 0x192   : > { %v3604_v0 = vadd.f32 %v624_v45, %v334_v52 }
 0x194   : > { %v3033_v46 = vpop.f32.mrb[2].mxu1 }
 0x195   : > { %v636_v47 = vpop.f32.mrb[3].mxu1  ;;  %v3606_v12 = vadd.f32 %v3033_v46, %v349_v59 }
 0x196   : > { %v3608_v16 = vadd.f32 %v636_v47, %v344_v61  ;;  %v4230_v61 = vand.u32 4294901760, %v4215_v44 }
 0x198   : > { %v3036_v48 = vpop.f32.mrb[4].mxu1 }
 0x199   : > { %v648_v49 = vpop.f32.mrb[5].mxu1  ;;  %v3610_v26 = vadd.f32 %v3036_v48, %v359_v15  ;;  %v4220_v48 = vsub.f32 %v4187_v18, %v1336_v30 }
 0x19a   : > { %v3612_v28 = vadd.f32 %v648_v49, %v354_v19  ;;  %v4223_v49 = vsel %vm1216_vm2, %v1175_v37, 0 }
 0x19c   : > { %v3039_v50 = vpop.f32.mrb[6].mxu1 }
 0x19d   : > { %v660_v51 = vpop.f32.mrb[7].mxu1  ;;  %v3614_v7 = vadd.f32 %v3039_v50, %v369_v38 }
 0x19e   : > { %v3616_v45 = vadd.f32 %v660_v51, %v364_v9 }
 0x1b2   : > { %v3094_v1 = vpop.f32.mrb[0].mxu0 }
 0x1b3   : > { %v3603_v4 = vadd.f32 %v3602_v62, %v3094_v1  ;;  %v1114_v5 = vpop.f32.mrb[1].mxu0  ;;  %v4233_v1 = vand.u32 4294901760, %v4223_v49 }
 0x1b4   : > { %v3605_v6 = vadd.f32 %v3604_v0, %v1114_v5 }
 0x1b5   : > { %3755 = vtanh.f32 %v3603_v4 }
 0x1b6   : > { %3757 = vtanh.f32 %v3605_v6  ;;  %v3097_v17 = vpop.f32.mrb[2].mxu0 }
 0x1b7   : > { %v3607_v20 = vadd.f32 %v3606_v12, %v3097_v17  ;;  %v1126_v21 = vpop.f32.mrb[3].mxu0 }
 0x1b8   : > { %v3609_v23 = vadd.f32 %v3608_v16, %v1126_v21 }
 0x1b9   : > { %3759 = vtanh.f32 %v3607_v20 }
 0x1ba   : > { %3761 = vtanh.f32 %v3609_v23  ;;  %v3100_v29 = vpop.f32.mrb[4].mxu0 }
 0x1bb   : > { %v3611_v32 = vadd.f32 %v3610_v26, %v3100_v29  ;;  %v1138_v33 = vpop.f32.mrb[5].mxu0 }
 0x1bc   : > { %v3613_v40 = vadd.f32 %v3612_v28, %v1138_v33 }
 0x1bd   : > { %v1165_v42 = vmax.f32 %v3611_v32, 0.0 }
 0x1be   : > { %v1164_v46 = vmax.f32 %v3613_v40, 0.0  ;;  %v3103_v47 = vpop.f32.mrb[6].mxu0 }
 0x1bf   : > { %v3756_v52 = vpop.eup %3755  ;;  %v1257_v53 = vand.u32 4294901760, %v1165_v42  ;;  %v3615_v50 = vadd.f32 %v3614_v7, %v3103_v47  ;;  %v1150_v54 = vpop.f32.mrb[7].mxu0 }
 0x1c0   : > { %v3758_v51 = vpop.eup %3757  ;;  %v1245_v57 = vand.u32 4294901760, %v3756_v52  ;;  %v1254_v58 = vand.u32 4294901760, %v1164_v46  ;;  %v3617_v59 = vadd.f32 %v3616_v45, %v1150_v54 }
 0x1c1   : > { %v1242_v62 = vand.u32 4294901760, %v3758_v51  ;;  %v1431_v63 = vsub.f32 %v1165_v42, %v1257_v53  ;;  %v1167_v0 = vmax.f32 %v3615_v50, 0.0 }
 0x1c2   : > { %v4235_v3 = vpack.c.bf16 %v1257_v53, %v1254_v58  ;;  %v1424_v4 = vsub.f32 %v1164_v46, %v1254_v58  ;;  %v1166_v5 = vmax.f32 %v3617_v59, 0.0  ;;  %v1403_v6 = vsub.f32 %v3756_v52, %v1245_v57 }
 0x1c3   : > { %v3760_v11 = vpop.eup %3759  ;;  %v4237_v12 = vpack.c.bf16 %v1245_v57, %v1242_v62  ;;  %v1432_v14 = vand.u32 4294901760, %v1431_v63  ;;  %v1263_v15 = vand.u32 4294901760, %v1167_v0  ;;  %v1396_v16 = vsub.f32 %v3758_v51, %v1242_v62 }
 0x1c4   : > { %v3762_v17 = vpop.eup %3761  ;;  %v1251_v19 = vand.u32 4294901760, %v3760_v11  ;;  %v1425_v20 = vand.u32 4294901760, %v1424_v4  ;;  %v1260_v21 = vand.u32 4294901760, %v1166_v5  ;;  %v1404_v23 = vand.u32 4294901760, %v1403_v6 }
 0x1c5   : > { %v1248_v25 = vand.u32 4294901760, %v3762_v17  ;;  %v1445_v26 = vsub.f32 %v1167_v0, %v1263_v15  ;;  %3411 = vmatprep.subr.bf16.mxu1 %v4237_v12  ;;  %v1397_v28 = vand.u32 4294901760, %v1396_v16  ;;  %v1433_v29 = vsub.f32 %v1431_v63, %v1432_v14 }
 0x1c6   : > { %v4240_v31 = vpack.c.bf16 %v1263_v15, %v1260_v21  ;;  %v1438_v32 = vsub.f32 %v1166_v5, %v1260_v21  ;;  %3413 = vmatpush3.bf16.msra.mxu1 %v4237_v12  ;;  %v1405_v33 = vsub.f32 %v1403_v6, %v1404_v23  ;;  %v1417_v37 = vsub.f32 %v3760_v11, %v1251_v19 }
 0x1c7   : > { %v4243_v38 = vpack.c.bf16 %v1251_v19, %v1248_v25  ;;  %v1446_v40 = vand.u32 4294901760, %v1445_v26  ;;  %v1398_v9 = vsub.f32 %v1396_v16, %v1397_v28  ;;  %v1410_v7 = vsub.f32 %v3762_v17, %v1248_v25 }
 0x1c8   : > { %v1439_v42 = vand.u32 4294901760, %v1438_v32  ;;  %v1406_v45 = vand.u32 4294901760, %v1405_v33  ;;  %v1418_v46 = vand.u32 4294901760, %v1417_v37  ;;  %v1426_v47 = vsub.f32 %v1424_v4, %v1425_v20 }
 0x1c9   : > { %3415 = vmatprep.subr.bf16.mxu1 %v4243_v38  ;;  %v1399_v52 = vand.u32 4294901760, %v1398_v9  ;;  %v1411_v53 = vand.u32 4294901760, %v1410_v7  ;;  %v1434_v50 = vand.u32 4294901760, %v1433_v29  ;;  %v1447_v54 = vsub.f32 %v1445_v26, %v1446_v40 }
 0x1ca   : > { %3417 = vmatpush3.bf16.msra.mxu1 %v4243_v38  ;;  %v1419_v51 = vsub.f32 %v1417_v37, %v1418_v46  ;;  %v1427_v57 = vand.u32 4294901760, %v1426_v47  ;;  %v1440_v58 = vsub.f32 %v1438_v32, %v1439_v42  ;;  %v3442_v59 = vpack.c.bf16 %v1403_v6, %v1396_v16 }
 0x1cb   : > { %3419 = vmatprep.subr.bf16.mxu1 %v4235_v3  ;;  %v3426_v62 = vpack.c.bf16 %v1406_v45, %v1399_v52  ;;  %v1412_v0 = vsub.f32 %v1410_v7, %v1411_v53  ;;  %v1448_v5 = vand.u32 4294901760, %v1447_v54  ;;  %v3446_v11 = vpack.c.bf16 %v1417_v37, %v1410_v7 }
 0x1cc   : > { %v1420_v15 = vand.u32 4294901760, %v1419_v51  ;;  %v3434_v17 = vpack.c.bf16 %v1434_v50, %v1427_v57  ;;  %v1441_v19 = vand.u32 4294901760, %v1440_v58  ;;  %v3450_v21 = vpack.c.bf16 %v1431_v63, %v1424_v4 }
 0x1cd   : > { %v1413_v25 = vand.u32 4294901760, %v1412_v0  ;;  %v3454_v33 = vpack.c.bf16 %v1445_v26, %v1438_v32  ;;  %v4248_v29 = vpack.c.bf16 %v1404_v23, %v1397_v28  ;;  %v4250_v9 = vpack.c.bf16 %v1418_v46, %v1411_v53 }
 0x1ce   : > { %3421 = vmatpush3.bf16.msra.mxu1 %v4235_v3  ;;  %v3438_v47 = vpack.c.bf16 %v1448_v5, %v1441_v19  ;;  %v4255_v6 = vsub.f32 %v4215_v44, %v4230_v61  ;;  %v4257_v16 = vpack.c.bf16 %v1432_v14, %v1425_v20  ;;  %v4259_v37 = vpack.c.bf16 %v1446_v40, %v1439_v42 }
 0x1cf   : > { %3423 = vmatprep.subr.bf16.mxu1 %v4240_v31  ;;  %v3430_v63 = vpack.c.bf16 %v1420_v15, %v1413_v25  ;;  %v1328_v4 = vand.u32 4294901760, %v4211_v41  ;;  %v1347_v23 = vsub.f32 %v4194_v27, %v1346_v43  ;;  %v1366_v26 = vand.u32 4294901760, %v4227_v56 }
 0x1d0   : > { %v4269_v28 = vsub.f32 %v4223_v49, %v4233_v1  ;;  %v1338_v44 = vand.u32 4294901760, %v4220_v48  ;;  %v1357_v14 = vsub.f32 %v4201_v34, %v1356_v55  ;;  %v1376_v41 = vand.u32 4294901760, %v4255_v6 }
 0x1d1   : > { %v1348_v20 = vand.u32 4294901760, %v1347_v23  ;;  %v1367_v32 = vsub.f32 %v4227_v56, %v1366_v26 }
 0x1d2   : > { %3425 = vmatpush3.bf16.msra.mxu1 %v4240_v31  ;;  %v1386_v49 = vand.u32 4294901760, %v4269_v28  ;;  %v1358_v40 = vand.u32 4294901760, %v1357_v14  ;;  %v1377_v48 = vsub.f32 %v4255_v6, %v1376_v41 }
 0x1d3   : > { %3427 = vmatprep.subr.bf16.mxu1 %v3426_v62  ;;  %v1368_v7 = vand.u32 4294901760, %v1367_v32 }
 0x1d4   : > { %v1387_v42 = vsub.f32 %v4269_v28, %v1386_v49  ;;  %v1378_v45 = vand.u32 4294901760, %v1377_v48 }
 0x1d5   : > { %3121 = vmatmul.mubr.f32.vlgmr.msra.gmra.mrb[8].mxu1 %v1328_v4 }
 0x1d6   : > { %3429 = vmatpush3.bf16.msra.mxu1 %v3426_v62  ;;  %3123 = vmatprep.mubr.f32.mxu1 %v1338_v44  ;;  %v1388_v46 = vand.u32 4294901760, %v1387_v42 }
 0x1d7   : > { %3431 = vmatprep.subr.bf16.mxu1 %v3430_v63 }
 0x1d9   : > { %3124 = vmatmul.mubr.f32.gmra.mrb[10].mxu1 %v1348_v20 }
 0x1da   : > { %3433 = vmatpush3.bf16.msra.mxu1 %v3430_v63  ;;  %3126 = vmatprep.mubr.f32.mxu1 %v1358_v40 }
 0x1db   : > { %3435 = vmatprep.subr.bf16.mxu1 %v3434_v17 }
 0x1dd   : > { %3127 = vmatmul.mubr.f32.gmra.mrb[12].mxu1 %v1368_v7 }
 0x1de   : > { %3437 = vmatpush3.bf16.msra.mxu1 %v3434_v17  ;;  %3129 = vmatprep.mubr.f32.mxu1 %v1378_v45 }
 0x1df   : > { %3439 = vmatprep.subr.bf16.mxu1 %v3438_v47 }
 0x1e1   : > { %3130 = vmatmul.mubr.f32.gmra.mrb[14].mxu1 %v1388_v46 }
 0x1e2   : > { %3441 = vmatpush3.bf16.msra.mxu1 %v3438_v47  ;;  %3148 = vmatprep.mubr.f32.mxu1 %v4149_v10 }
 0x1e3   : > { %3443 = vmatprep.subr.bf16.mxu1 %v3442_v59 }
 0x1e5   : > { %3149 = vmatmul.mubr.f32.vlgmr.msra.gmra.mrb[8].mxu1 %v4169_v60 }
 0x1e6   : > { %3445 = vmatpush3.bf16.msra.mxu1 %v3442_v59  ;;  %3151 = vmatprep.mubr.f32.mxu1 %v4174_v2 }
 0x1e7   : > { %3447 = vmatprep.subr.bf16.mxu1 %v3446_v11 }
 0x1e9   : > { %3152 = vmatmul.mubr.f32.gmra.mrb[10].mxu1 %v4181_v13 }
 0x1ea   : > { %3449 = vmatpush3.bf16.msra.mxu1 %v3446_v11  ;;  %3154 = vmatprep.mubr.f32.mxu1 %v4189_v22 }
 0x1eb   : > { %3451 = vmatprep.subr.bf16.mxu1 %v3450_v21 }
 0x1ed   : > { %3155 = vmatmul.mubr.f32.gmra.mrb[12].mxu1 %v4203_v35 }
 0x1ee   : > { %3453 = vmatpush3.bf16.msra.mxu1 %v3450_v21  ;;  %3157 = vmatprep.mubr.f32.mxu1 %v4230_v61 }
 0x1ef   : > { %3455 = vmatprep.subr.bf16.mxu1 %v3454_v33 }
 0x1f1   : > { %3158 = vmatmul.mubr.f32.gmra.mrb[14].mxu1 %v4233_v1 }
 0x1f2   : > { %3457 = vmatpush3.bf16.msra.mxu1 %v3454_v33  ;;  %3176 = vmatprep.mubr.f32.mxu1 %v4152_v36  ;;  %v2087_v36 = vld [vmem:[%s4496_s4] sm:$0xff] }
 0x1f3   : > { %3459 = vmatprep.subr.bf16.mxu1 %v4237_v12 }
 0x1f5   : > { %3177 = vmatmul.mubr.f32.vlgmr.msra.gmra.mrb[8].mxu1 %v4178_v8 }
 0x1f6   : > { %3461 = vmatpush3.bf16.msra.mxu1 %v4237_v12  ;;  %3179 = vmatprep.mubr.f32.mxu1 %v4187_v18  ;;  %v1184_v18 = vpop.permute.xlu1 %1183 }
 0x1f7   : > { %3463 = vmatprep.subr.bf16.mxu1 %v4243_v38 }
 0x1f9   : > { %3180 = vmatmul.mubr.f32.gmra.mrb[10].mxu1 %v4194_v27 }
 0x1fa   : > { %3465 = vmatpush3.bf16.msra.mxu1 %v4243_v38  ;;  %3182 = vmatprep.mubr.f32.mxu1 %v4201_v34  ;;  %v1194_v27 = vpop.permute.xlu1 %1193 }
 0x1fb   : > { %3467 = vmatprep.subr.bf16.mxu1 %v4235_v3 }
 0x1fd   : > { %3183 = vmatmul.mubr.f32.gmra.mrb[12].mxu1 %v4227_v56 }
 0x1fe   : > { %3469 = vmatpush3.bf16.msra.mxu1 %v4235_v3  ;;  %3185 = vmatprep.mubr.f32.mxu1 %v4255_v6 }
 0x1ff   : > { %3471 = vmatprep.subr.bf16.mxu1 %v4240_v31 }
 0x201   : > { %3186 = vmatmul.mubr.f32.gmra.mrb[14].mxu1 %v4269_v28 }
 0x202   : > { %3473 = vmatpush3.bf16.msra.mxu1 %v4240_v31  ;;  %3204 = vmatprep.mubr.f32.mxu1 %v1316_v39 }
 0x203   : > { %3475 = vmatprep.subr.bf16.mxu1 %v4248_v29 }
 0x205   : > { %3205 = vmatmul.mubr.f32.vlgmr.msra.gmra.mrb[8].mxu1 %v1326_v24  ;;  %v2088_v24 = vld [vmem:[%s4496_s4 + $0x8] sm:$0xff] }
 0x206   : > { %3477 = vmatpush3.bf16.msra.mxu1 %v4248_v29  ;;  %3207 = vmatprep.mubr.f32.mxu1 %v1336_v30  ;;  %v2103_v34 = vsel %vm1216_vm2, %v2088_v24, 0 }
 0x207   : > { %3479 = vmatprep.subr.bf16.mxu1 %v4250_v9 }
 0x209   : > { %3208 = vmatmul.mubr.f32.gmra.mrb[10].mxu1 %v1346_v43 }
 0x20a   : > { %3481 = vmatpush3.bf16.msra.mxu1 %v4250_v9  ;;  %3210 = vmatprep.mubr.f32.mxu1 %v1356_v55 }
 0x20b   : > { %3483 = vmatprep.subr.bf16.mxu1 %v4257_v16 }
 0x20d   : > { %3211 = vmatmul.mubr.f32.gmra.mrb[12].mxu1 %v1366_v26 }
 0x20e   : > { %3485 = vmatpush3.bf16.msra.mxu1 %v4257_v16  ;;  %3213 = vmatprep.mubr.f32.mxu1 %v1376_v41 }
 0x20f   : > { %3487 = vmatprep.subr.bf16.mxu1 %v4259_v37 }
 0x211   : > { %3214 = vmatmul.mubr.f32.gmra.mrb[14].mxu1 %v1386_v49 }
 0x212   : > { %3489 = vmatpush3.bf16.msra.mxu1 %v4259_v37  ;;  %3232 = vmatprep.mubr.f32.mxu1 %v4149_v10 }
 0x213   : > { %3491 = vmatprep.subr.bf16.mxu1 %v4237_v12 }
 0x215   : > { %3233 = vmatmul.mubr.f32.vlgmr.msra.gmra.mrb[8].mxu1 %v4169_v60 }
 0x216   : > { %3493 = vmatpush3.bf16.msra.mxu1 %v4237_v12  ;;  %3235 = vmatprep.mubr.f32.mxu1 %v4174_v2 }
 0x217   : > { %3495 = vmatprep.subr.bf16.mxu1 %v4243_v38 }
 0x219   : > { %3236 = vmatmul.mubr.f32.gmra.mrb[10].mxu1 %v4181_v13 }
 0x21a   : > { %3497 = vmatpush3.bf16.msra.mxu1 %v4243_v38  ;;  %3238 = vmatprep.mubr.f32.mxu1 %v4189_v22 }
 0x21b   : > { %3499 = vmatprep.subr.bf16.mxu1 %v4235_v3 }
 0x21d   : > { %3239 = vmatmul.mubr.f32.gmra.mrb[12].mxu1 %v4203_v35 }
 0x21e   : > { %3501 = vmatpush3.bf16.msra.mxu1 %v4235_v3  ;;  %3241 = vmatprep.mubr.f32.mxu1 %v4230_v61 }
 0x21f   : > { %3503 = vmatprep.subr.bf16.mxu1 %v4240_v31 }
 0x221   : > { %3242 = vmatmul.mubr.f32.gmra.mrb[14].mxu1 %v4233_v1 }
 0x222   : > { %3505 = vmatpush3.bf16.msra.mxu1 %v4240_v31  ;;  %3260 = vmatprep.mubr.f32.mxu1 %v4149_v10  ;;  %v2100_v10 = vsel %vm1216_vm2, %v2087_v36, 0  ;;  %v1204_v31 = vpop.permute.xlu1 %1203 }
 0x223   : > { %v4363_v39 = vand.u32 4294901760, %v2100_v10 }
 0x225   : > { %3261 = vmatmul.mubr.f32.vlgmr.msra.gmra.mrb[8].mxu1 %v4169_v60  ;;  %v4366_v60 = vsub.f32 %v2100_v10, %v4363_v39  ;;  %3307 = vmatprep.mubr.f32.mxu0 %v4363_v39 }
 0x226   : > { %3263 = vmatprep.mubr.f32.mxu1 %v4174_v2  ;;  %v1214_v62 = vpop.permute.xlu1 %1213 }
 0x227   : > { %v2180_v2 = vand.u32 4294901760, %v4366_v60 }
 0x229   : > { %3264 = vmatmul.mubr.f32.gmra.mrb[10].mxu1 %v4181_v13  ;;  %v2181_v8 = vsub.f32 %v4366_v60, %v2180_v2 }
 0x22a   : > { %3266 = vmatprep.mubr.f32.mxu1 %v4189_v22  ;;  %v1179_v22 = vpop.permute.xlu0 %1178 }
 0x22b   : > { %v2182_v13 = vand.u32 4294901760, %v2181_v8 }
 0x22d   : > { %3267 = vmatmul.mubr.f32.gmra.mrb[12].mxu1 %v4203_v35 }
 0x22e   : > { %3269 = vmatprep.mubr.f32.mxu1 %v4230_v61  ;;  %v1189_v35 = vpop.permute.xlu0 %1188  ;;  %v4377_v61 = vand.u32 4294901760, %v2103_v34 }
 0x230   : > { %v4380_v53 = vsub.f32 %v2103_v34, %v4377_v61 }
 0x231   : > { %3270 = vmatmul.mubr.f32.gmra.mrb[14].mxu1 %v4233_v1 }
 0x232   : > { %3288 = vmatprep.mubr.f32.mxu1 %v2182_v13  ;;  %v1199_v52 = vpop.permute.xlu0 %1198  ;;  %v2190_v59 = vand.u32 4294901760, %v4380_v53 }
 0x234   : > { %v4388_v37 = vsub.f32 %v4380_v53, %v2190_v59 }
 0x236   : > { %v1209_v15 = vpop.permute.xlu0 %1208 }
 0x2f8   : > { %v3262_v30 = vpop.f32.mrb[8].mxu1 }
 0x2f9   : > { %v3618_v43 = vadd.f32 %v3262_v30, %v1184_v18  ;;  %v2033_v55 = vpop.f32.mrb[9].mxu1 }
 0x2fa   : > { %v3619_v56 = vadd.f32 %v2033_v55, %v1179_v22 }
 0x2fb   : > { %3763 = vtanh.f32 %v3618_v43 }
 0x2fc   : > { %3765 = vtanh.f32 %v3619_v56  ;;  %v3265_v1 = vpop.f32.mrb[10].mxu1 }
 0x2fd   : > { %v3620_v3 = vadd.f32 %v3265_v1, %v1194_v27  ;;  %v2045_v12 = vpop.f32.mrb[11].mxu1 }
 0x2fe   : > { %v3621_v38 = vadd.f32 %v2045_v12, %v1189_v35 }
 0x2ff   : > { %3767 = vtanh.f32 %v3620_v3 }
 0x300   : > { %3769 = vtanh.f32 %v3621_v38  ;;  %v3268_v50 = vpop.f32.mrb[12].mxu1 }
 0x301   : > { %v3622_v54 = vadd.f32 %v3268_v50, %v1204_v31  ;;  %v2057_v51 = vpop.f32.mrb[13].mxu1 }
 0x302   : > { %v3623_v57 = vadd.f32 %v2057_v51, %v1199_v52 }
 0x303   : > { %v2084_v58 = vmax.f32 %v3622_v54, 0.0 }
 0x304   : > { %v2083_v0 = vmax.f32 %v3623_v57, 0.0  ;;  %v3271_v5 = vpop.f32.mrb[14].mxu1 }
 0x305   : > { %v3764_v11 = vpop.eup %3763  ;;  %v2121_v17 = vand.u32 4294901760, %v2084_v58  ;;  %v3624_v19 = vadd.f32 %v3271_v5, %v1214_v62  ;;  %v2069_v21 = vpop.f32.mrb[15].mxu1 }
 0x306   : > { %v3766_v25 = vpop.eup %3765  ;;  %v2109_v33 = vand.u32 4294901760, %v3764_v11  ;;  %v2118_v29 = vand.u32 4294901760, %v2083_v0  ;;  %v3625_v9 = vadd.f32 %v2069_v21, %v1209_v15 }
 0x307   : > { %v2106_v47 = vand.u32 4294901760, %v3766_v25  ;;  %v4383_v6 = vsub.f32 %v2084_v58, %v2121_v17  ;;  %v2086_v16 = vmax.f32 %v3624_v19, 0.0 }
 0x308   : > { %v4390_v63 = vpack.c.bf16 %v2121_v17, %v2118_v29  ;;  %v2228_v4 = vsub.f32 %v2083_v0, %v2118_v29  ;;  %v2085_v23 = vmax.f32 %v3625_v9, 0.0  ;;  %v2207_v26 = vsub.f32 %v3764_v11, %v2109_v33 }
 0x309   : > { %v3768_v28 = vpop.eup %3767  ;;  %v4392_v44 = vpack.c.bf16 %v2109_v33, %v2106_v47  ;;  %v2236_v14 = vand.u32 4294901760, %v4383_v6  ;;  %v2127_v41 = vand.u32 4294901760, %v2086_v16  ;;  %v2200_v20 = vsub.f32 %v3766_v25, %v2106_v47 }
 0x30a   : > { %v3770_v32 = vpop.eup %3769  ;;  %v2115_v49 = vand.u32 4294901760, %v3768_v28  ;;  %v2229_v40 = vand.u32 4294901760, %v2228_v4  ;;  %v2124_v48 = vand.u32 4294901760, %v2085_v23  ;;  %v2208_v7 = vand.u32 4294901760, %v2207_v26 }
 0x30b   : > { %v2112_v42 = vand.u32 4294901760, %v3770_v32  ;;  %v2249_v45 = vsub.f32 %v2086_v16, %v2127_v41  ;;  %3507 = vmatprep.subr.bf16.mxu1 %v4392_v44  ;;  %v2201_v46 = vand.u32 4294901760, %v2200_v20  ;;  %v2237_v36 = vsub.f32 %v4383_v6, %v2236_v14 }
 0x30c   : > { %v4397_v10 = vpack.c.bf16 %v2127_v41, %v2124_v48  ;;  %v2242_v8 = vsub.f32 %v2085_v23, %v2124_v48  ;;  %3509 = vmatpush3.bf16.msra.mxu1 %v4392_v44  ;;  %v2209_v13 = vsub.f32 %v2207_v26, %v2208_v7  ;;  %v2221_v18 = vsub.f32 %v3768_v28, %v2115_v49  ;;  %v3775_v41 = vld [vmem:[%s4038_s10] sm:$0xff]  ;;  %s3782_s10 = scalar_lea.vmem %s3781_s20, 512 }
 0x30d   : > { %v4400_v22 = vpack.c.bf16 %v2115_v49, %v2112_v42  ;;  %v2250_v24 = vand.u32 4294901760, %v2249_v45  ;;  %v2202_v27 = vsub.f32 %v2200_v20, %v2201_v46  ;;  %v2214_v30 = vsub.f32 %v3770_v32, %v2112_v42  ;;  %p3784_p3 = scmp.lt.s32.totalorder %s3782_s10, %s3776_s25 }
 0x30e   : > { %v2243_v34 = vand.u32 4294901760, %v2242_v8  ;;  %v2210_v35 = vand.u32 4294901760, %v2209_v13  ;;  %v2222_v43 = vand.u32 4294901760, %v2221_v18  ;;  %v2230_v55 = vsub.f32 %v2228_v4, %v2229_v40 }
 0x30f   : > { %3511 = vmatprep.subr.bf16.mxu1 %v4400_v22  ;;  %v2203_v56 = vand.u32 4294901760, %v2202_v27  ;;  %v2215_v1 = vand.u32 4294901760, %v2214_v30  ;;  %v2238_v3 = vand.u32 4294901760, %v2237_v36  ;;  %v2251_v12 = vsub.f32 %v2249_v45, %v2250_v24  ;;  %p3785_p4 = por %p3784_p3, %p3783_p2 }
 0x310   : > { %3513 = vmatpush3.bf16.msra.mxu1 %v4400_v22  ;;  %v2223_v31 = vsub.f32 %v2221_v18, %v2222_v43  ;;  %v2231_v38 = vand.u32 4294901760, %v2230_v55  ;;  %v2244_v52 = vsub.f32 %v2242_v8, %v2243_v34  ;;  %v3538_v50 = vpack.c.bf16 %v2207_v26, %v2200_v20  ;;  %v2689_v26 = vpop.permute.xlu1 %2688 }
 0x311   : > { %3515 = vmatprep.subr.bf16.mxu1 %v4390_v63  ;;  %v3522_v54 = vpack.c.bf16 %v2210_v35, %v2203_v56  ;;  %v2216_v51 = vsub.f32 %v2214_v30, %v2215_v1  ;;  %v2252_v57 = vand.u32 4294901760, %v2251_v12  ;;  %v3542_v58 = vpack.c.bf16 %v2221_v18, %v2214_v30  ;;  %p3786_p5 = pnand %p3785_p4, %p3779_p1 }
 0x312   : > { %v2224_v62 = vand.u32 4294901760, %v2223_v31  ;;  %v3530_v0 = vpack.c.bf16 %v2238_v3, %v2231_v38  ;;  %v2245_v5 = vand.u32 4294901760, %v2244_v52  ;;  %v3546_v11 = vpack.c.bf16 %v4383_v6, %v2228_v4 }
 0x313   : > { %3523 = vmatprep.subr.bf16.mxu0 %v3522_v54  ;;  %v2217_v15 = vand.u32 4294901760, %v2216_v51  ;;  %v3550_v17 = vpack.c.bf16 %v2249_v45, %v2242_v8  ;;  %v3570_v19 = vpack.c.bf16 %v2208_v7, %v2201_v46  ;;  %v3574_v21 = vpack.c.bf16 %v2222_v43, %v2215_v1 }
 0x314   : > { %3517 = vmatpush3.bf16.msra.mxu1 %v4390_v63  ;;  %3525 = vmatpush3.bf16.msra.mxu0 %v3522_v54  ;;  %v3534_v25 = vpack.c.bf16 %v2252_v57, %v2245_v5  ;;  %v3578_v33 = vpack.c.bf16 %v2236_v14, %v2229_v40  ;;  %v3582_v29 = vpack.c.bf16 %v2250_v24, %v2243_v34  ;;  %v2192_v47 = vand.u32 4294901760, %v4388_v37 }
 0x315   : > { %3519 = vmatprep.subr.bf16.mxu1 %v4397_v10  ;;  %v3526_v9 = vpack.c.bf16 %v2224_v62, %v2217_v15 }
 0x317   : > { %3527 = vmatprep.subr.bf16.mxu0 %v3526_v9 }
 0x318   : > { %3521 = vmatpush3.bf16.msra.mxu1 %v4397_v10  ;;  %3529 = vmatpush3.bf16.msra.mxu0 %v3526_v9 }
 0x319   : > { %3531 = vmatprep.subr.bf16.mxu0 %v3530_v0 }
 0x31b   : > { %3289 = vmatmul.mubr.f32.vlgmr.msra.gmra.mrb[16].mxu1 %v2192_v47 }
 0x31c   : > { %3533 = vmatpush3.bf16.msra.mxu0 %v3530_v0 }
 0x31d   : > { %3535 = vmatprep.subr.bf16.mxu0 %v3534_v25 }
 0x320   : > { %3537 = vmatpush3.bf16.msra.mxu0 %v3534_v25 }
 0x321   : > { %3539 = vmatprep.subr.bf16.mxu0 %v3538_v50 }
 0x323   : > { %3308 = vmatmul.mubr.f32.vlgmr.msra.gmra.mrb[8].mxu0 %v4377_v61 }
 0x324   : > { %3541 = vmatpush3.bf16.msra.mxu0 %v3538_v50  ;;  %3326 = vmatprep.mubr.f32.mxu0 %v4366_v60 }
 0x325   : > { %3543 = vmatprep.subr.bf16.mxu0 %v3542_v58 }
 0x328   : > { %3545 = vmatpush3.bf16.msra.mxu0 %v3542_v58 }
 0x329   : > { %3547 = vmatprep.subr.bf16.mxu0 %v3546_v11 }
 0x32c   : > { %3549 = vmatpush3.bf16.msra.mxu0 %v3546_v11 }
 0x32d   : > { %3551 = vmatprep.subr.bf16.mxu0 %v3550_v17 }
 0x330   : > { %3553 = vmatpush3.bf16.msra.mxu0 %v3550_v17 }
 0x331   : > { %3555 = vmatprep.subr.bf16.mxu0 %v4392_v44 }
 0x333   : > { %3327 = vmatmul.mubr.f32.vlgmr.msra.gmra.mrb[8].mxu0 %v4380_v53  ;;  %v2092_v53 = vpop.permute.xlu0 %2091 }
 0x334   : > { %3557 = vmatpush3.bf16.msra.mxu0 %v4392_v44  ;;  %3345 = vmatprep.mubr.f32.mxu0 %v2180_v2 }
 0x335   : > { %3559 = vmatprep.subr.bf16.mxu0 %v4400_v22 }
 0x338   : > { %3561 = vmatpush3.bf16.msra.mxu0 %v4400_v22 }
 0x339   : > { %3563 = vmatprep.subr.bf16.mxu0 %v4390_v63 }
 0x33c   : > { %3565 = vmatpush3.bf16.msra.mxu0 %v4390_v63 }
 0x33d   : > { %3567 = vmatprep.subr.bf16.mxu0 %v4397_v10 }
 0x340   : > { %3569 = vmatpush3.bf16.msra.mxu0 %v4397_v10 }
 0x341   : > { %3571 = vmatprep.subr.bf16.mxu0 %v3570_v19 }
 0x343   : > { %3346 = vmatmul.mubr.f32.vlgmr.msra.gmra.mrb[8].mxu0 %v2190_v59  ;;  %v2097_v59 = vpop.permute.xlu0 %2096 }
 0x344   : > { %3573 = vmatpush3.bf16.msra.mxu0 %v3570_v19  ;;  %3364 = vmatprep.mubr.f32.mxu0 %v4363_v39 }
 0x345   : > { %3575 = vmatprep.subr.bf16.mxu0 %v3574_v21 }
 0x348   : > { %3577 = vmatpush3.bf16.msra.mxu0 %v3574_v21 }
 0x349   : > { %3579 = vmatprep.subr.bf16.mxu0 %v3578_v33 }
 0x34c   : > { %3581 = vmatpush3.bf16.msra.mxu0 %v3578_v33 }
 0x34d   : > { %3583 = vmatprep.subr.bf16.mxu0 %v3582_v29 }
 0x350   : > { %3585 = vmatpush3.bf16.msra.mxu0 %v3582_v29 }
 0x351   : > { %3587 = vmatprep.subr.bf16.mxu0 %v4392_v44 }
 0x353   : > { %3365 = vmatmul.mubr.f32.vlgmr.msra.gmra.mrb[8].mxu0 %v4377_v61 }
 0x354   : > { %3589 = vmatpush3.bf16.msra.mxu0 %v4392_v44  ;;  %3383 = vmatprep.mubr.f32.mxu0 %v4363_v39 }
 0x355   : > { %3591 = vmatprep.subr.bf16.mxu0 %v4400_v22 }
 0x358   : > { %3593 = vmatpush3.bf16.msra.mxu0 %v4400_v22 }
 0x359   : > { %3595 = vmatprep.subr.bf16.mxu0 %v4390_v63 }
 0x35c   : > { %3597 = vmatpush3.bf16.msra.mxu0 %v4390_v63 }
 0x35d   : > { %3599 = vmatprep.subr.bf16.mxu0 %v4397_v10 }
 0x360   : > { %3601 = vmatpush3.bf16.msra.mxu0 %v4397_v10 }
 0x363   : > { %3384 = vmatmul.mubr.f32.vlgmr.msra.gmra.mrb[8].mxu0 %v4377_v61 }
 0x3ee   : > { %v3290_v60 = vpop.f32.mrb[16].mxu1 }
 0x3ef   : > { %v2184_v2 = vpop.f32.mrb[17].mxu1  ;;  %v2195_v39 = vadd.f32 %v3290_v60, %v2097_v59 }
 0x3f0   : > { %v2185_v6 = vadd.f32 %v2184_v2, %v2092_v53 }
 0x436   : > { %v3385_v16 = vpop.f32.mrb[8].mxu0 }
 0x437   : > { %v3627_v37 = vadd.f32 %v3385_v16, %v2195_v39  ;;  %v2675_v4 = vpop.f32.mrb[9].mxu0 }
 0x438   : > { %v3629_v23 = vadd.f32 %v2675_v4, %v2185_v6 }
 0x439   : > { %v2695_v14 = vmul.f32 %v3627_v37, %v2689_v26 }
 0x43a   : > { %3771 = vtanh.f32 %v3629_v23 }
 0x444   : > { %v3772_v63 = vpop.eup %3771 }
 0x445   : > { %v2691_v28 = vmul.f32 %v3772_v63, %v2689_v26 }
 0x447   : > { %v2692_v44 = vmul.f32 1.442695, %v2691_v28  ;;  %2698 = vst [vmem:[%s287_s11 + $0x8] sm:$0xff] %v2691_v28 }
 0x449   : > { %3773 = vpow2.f32 %v2692_v44 }
 0x453   : > { %v3774_v61 = vpop.eup %3773 }
 0x454   : > { %v2694_v20 = vmul.f32 %v3775_v41, %v3774_v61 }
 0x456   : > { %v2696_v32 = vadd.f32 %v2695_v14, %v2694_v20 }
 0x458   : > { %2697 = vst [vmem:[%s287_s11] sm:$0xff] %v2696_v32 }
 0x459   : > { %3789 = shalt.err (!%p3786_p5)
}
 0x45a   : > { %s3790_s15 = scalar_lea.hbm %s4446_s17, 256  ;;  %s3794_s29 = scalar_lea.hbm %s4498_s6, 512 }
 0x45b   : > { %p3791_p7 = scmp.ne.s32.totalorder %s4446_s17, %s3790_s15  ;;  %p3795_p12 = scmp.lt.u32.totalorder %s4446_s17, %s4498_s6 }
 0x45c   : > { %p3796_p13 = scmp.lt.u32.totalorder %s3794_s29, %s3790_s15  ;;  %p3798_p1 = scmp.lt.u32.totalorder %s3790_s15, %s4446_s17 }
 0x45d   : > { %p3792_p10 = pnand %p3791_p7, %p3918_p6 }
 0x45e   : > { %p3797_p0 = por %p3796_p13, %p3795_p12 }
 0x45f   : > { %p3793_p11 = pneg %p3792_p10 }
 0x460   : > { %p3799_p2 = por %p3798_p1, %p3797_p0 }
 0x462   : > { %p3800_p3 = pnand %p3799_p2, %p3793_p11 }
 0x464   : > { %3803 = shalt.err (!%p3800_p3)
}
 0x465   : > { %s3842_s13 = smov 128   ;;  %s3843_s14 = smov 256  }
 0x466   : > { %s3844_s16 = smov 8  }
 0x467   : > { %3710 = dma.vmem_to_hbm [thread:$0]  (%p3918_p6), %s4440_s12, 256, %s4446_s17, %s4450_s18, %s3842_s13, %s3843_s14, %s3844_s16  }
 0x468 PF: > { %s2727_s25 = sand.u32 1, %s3826_s21   ;;  %p3713_p4 = pnand %p2782_p9, %p3922_p8 }
 0x469   : > { %s2728_s19 = scalar_lea.sflag [#allocation4], %s2727_s25 }
 0x46a   : > { %3821 = dma.done.wait (!%p3713_p4), %s2728_s19, 256  }
 0x46b   : > { %3823 = vsyncadd (!%p3713_p4), %s2728_s19, 4294967040  ;;  %p16_p5 = scmp.ge.s32.totalorder %s3903_s27, 4   ;;  %s4501_s21 = smov %s3830_s22 }
 0x46c   : > { %s4502_s22 = smov %s3834_s23  ;;  %s4503_s23 = smov %s3916_s30 }
 0x46d   : > { %s4504_s24 = smov %s3903_s27  ;;  %18 = sbr.rel (!%p16_p5) target bundleno = 3 (0x3), region = 122 }
 0x474   :  { %2733 = vsyncpa [#allocation4], 1 }
 0x475   :  { %2735 = vsyncpa [#allocation4 + $0x1], 1 }

</bundles_post_ra>
